<compile_context>
chip_gen: v6e
topology: v6e:2x2x1
jax: 0.10.0
libtpu: 0.0.40
codegen_flags: <defaults>
</compile_context>

<pallas_src>
import functools

import jax
import jax.numpy as jnp
from jax.experimental import pallas as pl
from jax.experimental.pallas import tpu as pltpu


def _mask_kernel(x_ref, w1_ref, b1_ref, a_ref, w2_ref, b2_ref,
                 w3_ref, b3_ref, o_ref):
    # x_ref: (C, TM) tile -- channels on sublanes, pixels on lanes.
    x = x_ref[...]

    # up_conv (1x1 conv == channel matmul) + PReLU (single shared alpha).
    h1 = jnp.dot(w1_ref[...], x, preferred_element_type=jnp.float32) + b1_ref[...]
    alpha = a_ref[0]                              # scalar read from SMEM
    h1 = jnp.where(h1 >= 0, h1, alpha * h1)

    # gated_conv + Sigmoid.
    h2 = jnp.dot(w2_ref[...], h1, preferred_element_type=jnp.float32) + b2_ref[...]
    h2 = jax.nn.sigmoid(h2)

    # out_conv + ReLU.
    h3 = jnp.dot(w3_ref[...], h2, preferred_element_type=jnp.float32) + b3_ref[...]
    o_ref[...] = jnp.maximum(h3, 0.0).astype(o_ref.dtype)


@functools.partial(jax.jit, static_argnames=("tile_m",))
def mask_module_forward(x, params, tile_m=4096):
    """x: [N, C, H, W] float32 -> [N, 2*C, H, W] float32 (matches PyTorch)."""
    w1, b1, alpha, w2, b2, w3, b3 = params
    N, C, H, W = x.shape
    C2 = 2 * C
    HW = H * W

    # Lane-dense pixel tile: multiple of 128 (unless the image is tiny, in
    # which case a full-extent block is used), capped at tile_m and at the
    # 128-aligned per-sample pixel count.
    if HW >= 128:
        tm = min(tile_m, pl.cdiv(HW, 128) * 128)
        tm = max(128, (tm // 128) * 128)
    else:
        tm = HW                                   # full-dim block for tiny inputs

    HW_pad = pl.cdiv(HW, tm) * tm
    x3 = x.reshape(N, C, HW)                      # no NCHW<->NHWC transpose
    if HW_pad != HW:
        x3 = jnp.pad(x3, ((0, 0), (0, 0), (0, HW_pad - HW)))

    # Biases broadcast along lanes (pixels); weights stay PyTorch-native (Cout, Cin).
    b1c = b1.reshape(C2, 1)
    b2c = b2.reshape(C2, 1)
    b3c = b3.reshape(C2, 1)
    a1 = alpha.reshape(1)

    grid = (N, HW_pad // tm)

    flops = 2 * N * HW * (C * C2 + 2 * C2 * C2)
    bytes_accessed = 4 * (N * HW * (C + C2) + C * C2 + 2 * C2 * C2 + 3 * C2 + 1)
    cost = pl.CostEstimate(flops=flops,
                           transcendentals=N * HW * C2,
                           bytes_accessed=bytes_accessed)

    out = pl.pallas_call(
        _mask_kernel,
        out_shape=jax.ShapeDtypeStruct((N, C2, HW_pad), jnp.float32),
        grid_spec=pltpu.PrefetchScalarGridSpec(
            num_scalar_prefetch=0,
            grid=grid,
            in_specs=[
                pl.BlockSpec((None, C, tm), lambda n, i: (n, 0, i)),   # x tile
                pl.BlockSpec((C2, C), lambda n, i: (0, 0)),            # w1 (Cout,Cin)
                pl.BlockSpec((C2, 1), lambda n, i: (0, 0)),            # b1
                pl.BlockSpec(memory_space=pltpu.MemorySpace.SMEM),     # prelu alpha
                pl.BlockSpec((C2, C2), lambda n, i: (0, 0)),           # w2
                pl.BlockSpec((C2, 1), lambda n, i: (0, 0)),            # b2
                pl.BlockSpec((C2, C2), lambda n, i: (0, 0)),           # w3
                pl.BlockSpec((C2, 1), lambda n, i: (0, 0)),            # b3
            ],
            out_specs=pl.BlockSpec((None, C2, tm), lambda n, i: (n, 0, i)),
        ),
        compiler_params=pltpu.CompilerParams(
            dimension_semantics=("parallel", "parallel")),
        cost_estimate=cost,
    )(x3, w1, b1c, a1, w2, b2c, w3, b3c)

    if HW_pad != HW:
        out = out[:, :, :HW]                      # drop padded pixel columns
    return out.reshape(N, C2, H, W)


def init_params(key, in_channels):
    """Deterministic synthetic init. Conv2d (out,in,1,1) weights kept
    PyTorch-native as (Cout, Cin); kernel computes W @ x."""
    C, C2 = in_channels, 2 * in_channels
    k1, k2, k3, k4, k5, k6 = jax.random.split(key, 6)
    w1 = jax.random.normal(k1, (C2, C), jnp.float32) * 0.1
    b1 = jax.random.normal(k2, (C2,), jnp.float32) * 0.1
    alpha = jnp.array([0.25], dtype=jnp.float32)  # nn.PReLU() default: 1 shared param
    w2 = jax.random.normal(k3, (C2, C2), jnp.float32) * 0.1
    b2 = jax.random.normal(k4, (C2,), jnp.float32) * 0.1
    w3 = jax.random.normal(k5, (C2, C2), jnp.float32) * 0.1
    b3 = jax.random.normal(k6, (C2,), jnp.float32) * 0.1
    return (w1, b1, alpha, w2, b2, w3, b3)


def _reference(x, params):
    """Pure-JAX reference of the PyTorch forward (for sanity check)."""
    w1, b1, alpha, w2, b2, w3, b3 = params
    h = jnp.einsum('oc,nchw->nohw', w1, x) + b1[None, :, None, None]
    h = jnp.where(h >= 0, h, alpha[0] * h)
    h = jax.nn.sigmoid(jnp.einsum('oc,nchw->nohw', w2, h) + b2[None, :, None, None])
    h = jnp.maximum(jnp.einsum('oc,nchw->nohw', w3, h) + b3[None, :, None, None], 0.0)
    return h


if __name__ == "__main__":
    key = jax.random.PRNGKey(0)
    k_x, k_p = jax.random.split(key)

    N, C, H, W = 2, 4, 16, 16  # [batch, channels, num_frames, time_frames]
    x = jax.random.normal(k_x, (N, C, H, W), jnp.float32)
    params = init_params(k_p, C)

    out = mask_module_forward(x, params)
    out = jax.block_until_ready(out)

    ref = _reference(x, params)
    assert out.shape == (N, 2 * C, H, W), out.shape
    assert jnp.allclose(out, ref, atol=2e-5, rtol=2e-5), "mismatch vs reference"

    print("KERNEL_OK")
</pallas_src>

<mosaic_0001>
module attributes {stable_mosaic.version = 11 : i64} {
  func.func @_mask_kernel(%arg0: i32, %arg1: i32, %arg2: memref<1x4x256xf32, #tpu.memory_space<vmem>>, %arg3: memref<8x4xf32, #tpu.memory_space<vmem>>, %arg4: memref<8x1xf32, #tpu.memory_space<vmem>>, %arg5: memref<1xf32, #tpu.memory_space<smem>>, %arg6: memref<8x8xf32, #tpu.memory_space<vmem>>, %arg7: memref<8x1xf32, #tpu.memory_space<vmem>>, %arg8: memref<8x8xf32, #tpu.memory_space<vmem>>, %arg9: memref<8x1xf32, #tpu.memory_space<vmem>>, %arg10: memref<1x8x256xf32, #tpu.memory_space<vmem>>) attributes {dimension_semantics = [#tpu.dimension_semantics<parallel>, #tpu.dimension_semantics<parallel>], iteration_bounds = array<i64: 2, 1>, scalar_prefetch = 0 : i64, scratch_operands = 0 : i64, tpu.core_type = #tpu.core_type<tc>, window_params = [{transform_indices = @transform_0, window_bounds = array<i64: 1, 4, 256>}, {pipeline_mode = #tpu.pipeline_mode<synchronous>, transform_indices = @transform_1, window_bounds = array<i64: 8, 4>}, {pipeline_mode = #tpu.pipeline_mode<synchronous>, transform_indices = @transform_2, window_bounds = array<i64: 8, 1>}, {transform_indices = @transform_3, window_bounds = array<i64: 1>}, {pipeline_mode = #tpu.pipeline_mode<synchronous>, transform_indices = @transform_4, window_bounds = array<i64: 8, 8>}, {pipeline_mode = #tpu.pipeline_mode<synchronous>, transform_indices = @transform_5, window_bounds = array<i64: 8, 1>}, {pipeline_mode = #tpu.pipeline_mode<synchronous>, transform_indices = @transform_6, window_bounds = array<i64: 8, 8>}, {pipeline_mode = #tpu.pipeline_mode<synchronous>, transform_indices = @transform_7, window_bounds = array<i64: 8, 1>}, {transform_indices = @transform_8, window_bounds = array<i64: 1, 8, 256>}]} {
    %c0 = arith.constant 0 : index
    %c0_0 = arith.constant 0 : index
    %c0_1 = arith.constant 0 : index
    %0 = vector.load %arg2[%c0, %c0_0, %c0_1] : memref<1x4x256xf32, #tpu.memory_space<vmem>>, vector<1x4x256xf32>
    %1 = vector.shape_cast %0 : vector<1x4x256xf32> to vector<4x256xf32>
    %c0_2 = arith.constant 0 : index
    %c0_3 = arith.constant 0 : index
    %2 = vector.load %arg3[%c0_2, %c0_3] : memref<8x4xf32, #tpu.memory_space<vmem>>, vector<8x4xf32>
    %cst = arith.constant dense<0.000000e+00> : vector<8x256xf32>
    %3 = tpu.matmul %2, %1, %cst {dimension_numbers = #tpu.dot_dimension_numbers<[1], [0], [0], [1], [0, 0, 1, 1], [], []>} : vector<8x4xf32>, vector<4x256xf32>, vector<8x256xf32> -> vector<8x256xf32>
    %c0_4 = arith.constant 0 : index
    %c0_5 = arith.constant 0 : index
    %4 = vector.load %arg4[%c0_4, %c0_5] : memref<8x1xf32, #tpu.memory_space<vmem>>, vector<8x1xf32>
    %5 = vector.broadcast %4 : vector<8x1xf32> to vector<8x256xf32>
    %6 = arith.addf %3, %5 : vector<8x256xf32>
    %c0_6 = arith.constant 0 : index
    %7 = memref.load %arg5[%c0_6] : memref<1xf32, #tpu.memory_space<smem>>
    %cst_7 = arith.constant 0.000000e+00 : f32
    %8 = vector.broadcast %cst_7 : f32 to vector<8x256xf32>
    %9 = arith.cmpf oge, %6, %8 : vector<8x256xf32>
    %10 = vector.broadcast %7 : f32 to vector<8x256xf32>
    %11 = arith.mulf %10, %6 : vector<8x256xf32>
    %12 = arith.select %9, %6, %11 : vector<8x256xi1>, vector<8x256xf32>
    %c0_8 = arith.constant 0 : index
    %c0_9 = arith.constant 0 : index
    %13 = vector.load %arg6[%c0_8, %c0_9] : memref<8x8xf32, #tpu.memory_space<vmem>>, vector<8x8xf32>
    %cst_10 = arith.constant dense<0.000000e+00> : vector<8x256xf32>
    %14 = tpu.matmul %13, %12, %cst_10 {dimension_numbers = #tpu.dot_dimension_numbers<[1], [0], [0], [1], [0, 0, 1, 1], [], []>} : vector<8x8xf32>, vector<8x256xf32>, vector<8x256xf32> -> vector<8x256xf32>
    %c0_11 = arith.constant 0 : index
    %c0_12 = arith.constant 0 : index
    %15 = vector.load %arg7[%c0_11, %c0_12] : memref<8x1xf32, #tpu.memory_space<vmem>>, vector<8x1xf32>
    %16 = vector.broadcast %15 : vector<8x1xf32> to vector<8x256xf32>
    %17 = arith.addf %14, %16 : vector<8x256xf32>
    %18 = arith.negf %17 : vector<8x256xf32>
    %19 = math.exp %18 : vector<8x256xf32>
    %cst_13 = arith.constant 1.000000e+00 : f32
    %20 = vector.broadcast %cst_13 : f32 to vector<8x256xf32>
    %21 = arith.addf %20, %19 : vector<8x256xf32>
    %22 = arith.divf %20, %21 : vector<8x256xf32>
    %c0_14 = arith.constant 0 : index
    %c0_15 = arith.constant 0 : index
    %23 = vector.load %arg8[%c0_14, %c0_15] : memref<8x8xf32, #tpu.memory_space<vmem>>, vector<8x8xf32>
    %cst_16 = arith.constant dense<0.000000e+00> : vector<8x256xf32>
    %24 = tpu.matmul %23, %22, %cst_16 {dimension_numbers = #tpu.dot_dimension_numbers<[1], [0], [0], [1], [0, 0, 1, 1], [], []>} : vector<8x8xf32>, vector<8x256xf32>, vector<8x256xf32> -> vector<8x256xf32>
    %c0_17 = arith.constant 0 : index
    %c0_18 = arith.constant 0 : index
    %25 = vector.load %arg9[%c0_17, %c0_18] : memref<8x1xf32, #tpu.memory_space<vmem>>, vector<8x1xf32>
    %26 = vector.broadcast %25 : vector<8x1xf32> to vector<8x256xf32>
    %27 = arith.addf %24, %26 : vector<8x256xf32>
    %cst_19 = arith.constant 0.000000e+00 : f32
    %28 = vector.broadcast %cst_19 : f32 to vector<8x256xf32>
    %29 = arith.maximumf %27, %28 : vector<8x256xf32>
    %c0_20 = arith.constant 0 : index
    %c0_21 = arith.constant 0 : index
    %c0_22 = arith.constant 0 : index
    %30 = vector.load %arg10[%c0_20, %c0_21, %c0_22] : memref<1x8x256xf32, #tpu.memory_space<vmem>>, vector<1x8x256xf32>
    %31 = vector.shape_cast %30 : vector<1x8x256xf32> to vector<8x256xf32>
    %32 = vector.shape_cast %29 : vector<8x256xf32> to vector<1x8x256xf32>
    tpu.vector_store %arg10[%c0_20, %c0_21, %c0_22], %32 {strides = array<i32>} : memref<1x8x256xf32, #tpu.memory_space<vmem>>, vector<1x8x256xf32>,
    return
  }
  func.func @transform_0(%arg0: i32, %arg1: i32) -> (i32, i32, i32) {
    %c0_i32 = arith.constant 0 : i32
    %c0_i32_0 = arith.constant 0 : i32
    return %arg0, %c0_i32, %arg1 : i32, i32, i32
  }
  func.func @transform_1(%arg0: i32, %arg1: i32) -> (i32, i32) {
    %c0_i32 = arith.constant 0 : i32
    %c0_i32_0 = arith.constant 0 : i32
    %c0_i32_1 = arith.constant 0 : i32
    return %c0_i32, %c0_i32_0 : i32, i32
  }
  func.func @transform_2(%arg0: i32, %arg1: i32) -> (i32, i32) {
    %c0_i32 = arith.constant 0 : i32
    %c0_i32_0 = arith.constant 0 : i32
    %c0_i32_1 = arith.constant 0 : i32
    return %c0_i32, %c0_i32_0 : i32, i32
  }
  func.func @transform_3(%arg0: i32, %arg1: i32) -> i32 {
    %c0_i32 = arith.constant 0 : i32
    %c0_i32_0 = arith.constant 0 : i32
    return %c0_i32 : i32
  }
  func.func @transform_4(%arg0: i32, %arg1: i32) -> (i32, i32) {
    %c0_i32 = arith.constant 0 : i32
    %c0_i32_0 = arith.constant 0 : i32
    %c0_i32_1 = arith.constant 0 : i32
    return %c0_i32, %c0_i32_0 : i32, i32
  }
  func.func @transform_5(%arg0: i32, %arg1: i32) -> (i32, i32) {
    %c0_i32 = arith.constant 0 : i32
    %c0_i32_0 = arith.constant 0 : i32
    %c0_i32_1 = arith.constant 0 : i32
    return %c0_i32, %c0_i32_0 : i32, i32
  }
  func.func @transform_6(%arg0: i32, %arg1: i32) -> (i32, i32) {
    %c0_i32 = arith.constant 0 : i32
    %c0_i32_0 = arith.constant 0 : i32
    %c0_i32_1 = arith.constant 0 : i32
    return %c0_i32, %c0_i32_0 : i32, i32
  }
  func.func @transform_7(%arg0: i32, %arg1: i32) -> (i32, i32) {
    %c0_i32 = arith.constant 0 : i32
    %c0_i32_0 = arith.constant 0 : i32
    %c0_i32_1 = arith.constant 0 : i32
    return %c0_i32, %c0_i32_0 : i32, i32
  }
  func.func @transform_8(%arg0: i32, %arg1: i32) -> (i32, i32, i32) {
    %c0_i32 = arith.constant 0 : i32
    %c0_i32_0 = arith.constant 0 : i32
    return %arg0, %c0_i32, %arg1 : i32, i32, i32
  }
}

</mosaic_0001>

<bundles_post_ra>
// kernel: mask_module_forward.1
= control target key start
LH: loop header
LB: loop body
LE: loop exit
PB: predicated region body
PF: predicated region fallthrough
CT: control target
= control target key end

     0   :  { %s841_s29 = smov 0   ;;  %s843_s30 = smov 0   ;;  %s898_s0 = inlined_call_operand.vmem [shape: f32[2,4,256], index: 0, kind: input, shape index: {}]   ;;  %s899_s1 = inlined_call_operand.vmem [shape: f32[8,4], index: 1, kind: input, shape index: {}]   ;;  %s900_s2 = inlined_call_operand.vmem [shape: f32[8,1], index: 2, kind: input, shape index: {}]   ;;  %s901_s3 = inlined_call_operand.<no memory space> [shape: f32[1], index: 3, kind: input, shape index: {}]   ;;  %s902_s4 = inlined_call_operand.vmem [shape: f32[8,8], index: 4, kind: input, shape index: {}]   ;;  %s903_s5 = inlined_call_operand.vmem [shape: f32[8,1], index: 5, kind: input, shape index: {}]   ;;  %s904_s6 = inlined_call_operand.vmem [shape: f32[8,8], index: 6, kind: input, shape index: {}]   ;;  %s905_s7 = inlined_call_operand.vmem [shape: f32[8,1], index: 7, kind: input, shape index: {}]   ;;  %s906_s8 = inlined_call_operand.vmem [shape: f32[2,8,256], index: 8, kind: output, shape index: {}]  }
   0x1   :  { %13 = sst [smem:[#allocation2]] %s901_s3  ;;  %s845_s9 = smov 0  }
   0x2 LB: > { %s31_s3 = sadd.s32 1, %s785_s30  ;;  %p714_p0 = scmp.ge.s32.totalorder %s789_s9, 1  ;;  %s789_s9 = sphi %s845_s9, %s19_s9   ;;  %s785_s30 = sphi %s843_s30, %s908_s30   ;;  %s781_s29 = sphi %s841_s29, %s907_s29  }
   0x3   : > { %p33_p1 = scmp.ge.s32.totalorder %s31_s3, 2  ;;  %p284_p2 = scmp.lt.s32.totalorder %s789_s9, 3 }
   0x5   : > { %s910_s3 = smov (%p33_p1, %s31_s3), 0  ;;  %p285_p3 = pnand %p714_p0, %p284_p2 }
   0x6   : > { %p327_p4 = scmp.lt.s32.totalorder (!%p285_p3), %s781_s29, 1  ;;  %s436_s20 = sld [smem:[#allocation2]] (!%p285_p3) }
   0x7   : > { %288 = sbr.rel (%p285_p3) target bundleno = 653 (0x28d), region = 52 }
   0xc   : > { %v791_v0 = vmov 0.0   ;;  %v792_v1 = vmov 0   ;;  %v348_v2 = vld [vmem:[%s900_s2] sm:$0xff]  ;;  %s912_s29 = smov (!%p327_p4, %s781_s29), 1  ;;  %vm360_vm0 = vcmask 1043456   ;;  %vm356_vm1 = vcmask 31744  }
   0xd   : > { %429 = vmatprep.mubr.f32.mxu0 %v791_v0  ;;  %756 = vset.pattern.permute.xlu0 %v792_v1  ;;  %v445_v3 = vld [vmem:[%s903_s5] sm:$0xff]  ;;  %s728_s14 = sshll.u32 %s912_s29, 3  ;;  %v439_v10 = vstv %s436_s20  ;;  %vm451_vm4 = vcmask 64512   ;;  %s729_s27 = sshll.u32 %s912_s29, 4 }
   0xe   : > { %351 = vperm.xlu0 %756, %v348_v2   ;;  %519 = vmatprep.mubr.f32.mxu1 %v791_v0  ;;  %s334_s17 = scalar_lea.vmem %s898_s0, %s728_s14  ;;  %v347_v6 = vld [vmem:[%s899_s1] sm:$0xff]  ;;  %s344_s11 = scalar_lea.vmem %s906_s8, %s729_s27 }
   0xf   : > { %757 = vset.pattern.permute.xlu1 %v792_v1  ;;  %v346_v4 = vld [vmem:[%s334_s17] sm:$0xff] }
  0x10   : > { %v355_v5 = vcombine.high %v346_v4, %v346_v4  ;;  %v444_v16 = vld [vmem:[%s902_s4] sm:$0xff] }
  0x11   : > { %v539_v18 = vld [vmem:[%s905_s7] sm:$0xff] }
  0x12   : > { %448 = vperm.xlu0 %756, %v445_v3   ;;  %719 = vmatprep.subr.msk.mxu0 %vm360_vm0, %v355_v5  ;;  %v538_v31 = vld [vmem:[%s904_s6] sm:$0xff] }
  0x13   : > { %720 = vmatpush1.msk.msra.mxu0 %vm360_vm0, %v346_v4  ;;  %542 = vperm.xlu1 %757, %v539_v18  }
  0x14   : > { %721 = vmatmul.mubr.msk.f32.vlgmr.msra.gmra.mxu0 %vm356_vm1, %v347_v6 }
  0x15   : > { %612 = vmatprep.mubr.f32.mxu0 %v791_v0 }
  0x89   : > { %v352_v7 = vpop.permute.xlu0 %351 }
  0x8d   : > { %v449_v19 = vpop.permute.xlu0 %448 }
  0x8e   : > { %v543_v33 = vpop.permute.xlu1 %542 }
  0xd4   : > { %v431_v8 = vpop.f32.mrf.mxu0 }
  0xd5   : > { %v432_v9 = vadd.f32 %v431_v8, %v352_v7 }
  0xd6   : > { %v433_v11 = vpop.f32.mrf.mxu0 }
  0xd7   : > { %v434_v12 = vadd.f32 %v433_v11, %v352_v7  ;;  %v440_v13 = vmul.f32 %v439_v10, %v432_v9  ;;  %vm437_vm3 = vcmp.ge.f32.partialorder %v432_v9, 0.0 }
  0xd9   : > { %vm438_vm2 = vcmp.ge.f32.partialorder %v434_v12, 0.0  ;;  %v441_v14 = vmul.f32 %v439_v10, %v434_v12  ;;  %v442_v17 = vsel %vm437_vm3, %v432_v9, %v440_v13 }
  0xdb   : > { %v443_v15 = vsel %vm438_vm2, %v434_v12, %v441_v14 }
  0xdc   : > { %485 = vmatprep.subr.mxu1 %v443_v15 }
  0xdd   : > { %486 = vmatpush1.msra.mxu1 %v442_v17 }
  0xde   : > { %722 = vmatmul.mubr.msk.f32.vlgmr.msra.gmra.mxu1 %vm451_vm4, %v444_v16 }
 0x19e   : > { %v521_v20 = vpop.f32.mrf.mxu1 }
 0x19f   : > { %v522_v21 = vadd.f32 %v521_v20, %v449_v19 }
 0x1a0   : > { %v523_v22 = vpop.f32.mrf.mxu1 }
 0x1a1   : > { %v723_v23 = vmul.f32 -1.442695, %v522_v21  ;;  %v524_v24 = vadd.f32 %v523_v22, %v449_v19 }
 0x1a3   : > { %759 = vpow2.f32 %v723_v23  ;;  %v724_v25 = vmul.f32 -1.442695, %v524_v24 }
 0x1a5   : > { %761 = vpow2.f32 %v724_v25 }
 0x1b0   : > { %v760_v26 = vpop.eup %759 }
 0x1b1   : > { %v532_v28 = vadd.f32 1.0, %v760_v26 }
 0x1b2   : > { %v762_v27 = vpop.eup %761 }
 0x1b3   : > { %v533_v29 = vadd.f32 1.0, %v762_v27 }
 0x1b5   : > { %763 = vrcp.f32 %v533_v29 }
 0x1b6   : > { %765 = vrcp.f32 %v532_v28 }
 0x1c2   : > { %v764_v30 = vpop.eup %763 }
 0x1c3   : > { %v766_v32 = vpop.eup %765  ;;  %578 = vmatprep.subr.mxu0 %v764_v30 }
 0x1c4   : > { %579 = vmatpush1.msra.mxu0 %v766_v32 }
 0x1c5   : > { %725 = vmatmul.mubr.msk.f32.vlgmr.msra.gmra.mxu0 %vm451_vm4, %v538_v31 }
 0x285   : > { %v614_v34 = vpop.f32.mrf.mxu0 }
 0x286   : > { %v615_v35 = vadd.f32 %v614_v34, %v543_v33 }
 0x287   : > { %v616_v36 = vpop.f32.mrf.mxu0 }
 0x288   : > { %v619_v37 = vmax.f32 %v615_v35, 0.0  ;;  %v617_v38 = vadd.f32 %v616_v36, %v543_v33 }
 0x28a   : > { %621 = vst [vmem:[%s344_s11] sm:$0xff] %v619_v37  ;;  %v620_v39 = vmax.f32 %v617_v38, 0.0 }
 0x28c   : > { %622 = vst [vmem:[%s344_s11 + $0x8] sm:$0xff] %v620_v39 }
 0x28d PF: > { %s19_s9 = sadd.s32 1, %s789_s9   ;;  %s907_s29 = smov %s785_s30 }
 0x28e   : > { %p16_p5 = scmp.ge.s32.totalorder %s19_s9, 4   ;;  %s908_s30 = smov %s910_s3 }
 0x290   :  { %18 = sbr.rel (!%p16_p5) target bundleno = 2 (0x2), region = 82 }

</bundles_post_ra>
